<compile_context>
chip_gen: v7x
topology: tpu7x:2x2x1
jax: 0.10.0
libtpu: 0.0.40
codegen_flags: <defaults>
</compile_context>

<pallas_src>
import functools

import jax
import jax.numpy as jnp
from jax.experimental import pallas as pl
from jax.experimental.pallas import tpu as pltpu

_NEG_BIG = -1e30   # bias for padded action lanes -> exp() == 0 in softmax
_LANE = 128


def _round_up(x: int, m: int) -> int:
    return ((x + m - 1) // m) * m


def actor_discrete_kernel(state_ref, w1_ref, b1_ref, w2_ref, b2_ref,
                          w3_ref, b3_ref, out_ref):
    x = state_ref[...]

    # fc1 + relu
    h1 = jnp.dot(x, w1_ref[...], preferred_element_type=jnp.float32)
    h1 = jnp.maximum(h1 + b1_ref[...], 0.0)

    # fc2 + relu
    h2 = jnp.dot(h1, w2_ref[...], preferred_element_type=jnp.float32)
    h2 = jnp.maximum(h2 + b2_ref[...], 0.0)

    # fc3 (output lanes padded to 128) + softmax over the action axis.
    logits = jnp.dot(h2, w3_ref[...], preferred_element_type=jnp.float32)
    logits = logits + b3_ref[...]          # padded lanes get -1e30 -> exp == 0
    m = jnp.max(logits, axis=1, keepdims=True)
    e = jnp.exp(logits - m)
    denom = jnp.sum(e, axis=1, keepdims=True)
    # Exact normalization: this kernel is DMA/overhead bound, not EUP bound.
    out_ref[...] = (e / denom).astype(out_ref.dtype)


def pad_action_params(w3, b3):
    """One-time param prep: pad fc3 to 128 output lanes (lane-dense stores).

    Padded weight columns are 0 and padded bias lanes are -1e30, so padded
    lanes contribute exactly 0 to the softmax.
    """
    hidden, action_dim = w3.shape
    n_pad = _round_up(max(action_dim, _LANE), _LANE)
    w3p = jnp.zeros((hidden, n_pad), jnp.float32).at[:, :action_dim].set(w3)
    b3p = jnp.full((1, n_pad), _NEG_BIG, jnp.float32).at[:, :action_dim].set(
        jnp.reshape(b3, (1, action_dim)))
    return w3p, b3p


@functools.partial(jax.jit, static_argnames=("action_dim", "block_b"))
def actor_discrete_forward(state, w1, b1, w2, b2, w3p, b3p, *,
                           action_dim, block_b=4096):
    """state: (B, state_dim) f32.  wN: (in, out) f32 (transpose of PyTorch's
    (out, in)).  bN: (1, out) f32; w3p/b3p already lane-padded via
    pad_action_params.  Returns (B, action_dim) f32 softmax probabilities."""
    B, state_dim = state.shape
    hidden = w1.shape[1]
    n_pad = w3p.shape[1]

    # --- batch tiling ---------------------------------------------------------
    # tb: multiple of 8 (BlockSpec sublane rule), as large as block_b allows to
    # amortize per-grid-step overhead, but capped so the grid keeps >= 2 tiles
    # (lets v7x megacore shard the "parallel" axis; negligible cost on v5e/v6e).
    b8 = _round_up(B, 8)
    tb = min(block_b, b8)
    if b8 > 8:
        tb = min(tb, _round_up(pl.cdiv(b8, 2), 8))
    tb = _round_up(tb, 8)
    # No padded copy of `state` in HBM: Pallas clips the final partial block,
    # and any stale rows in that block only produce output rows that the
    # clipped writeback discards.
    grid = (pl.cdiv(B, tb),)

    # --- advisory cost estimate -----------------------------------------------
    flops = 2 * B * (state_dim * hidden + hidden * hidden + hidden * n_pad)
    transcendentals = B * n_pad            # exp lanes
    bytes_accessed = 4 * (state.size + w1.size + b1.size + w2.size + b2.size
                          + w3p.size + b3p.size + B * n_pad)

    resident = lambda shape: pl.BlockSpec(shape, lambda i: (0, 0))

    out_padded = pl.pallas_call(
        actor_discrete_kernel,
        out_shape=jax.ShapeDtypeStruct((B, n_pad), jnp.float32),
        grid_spec=pltpu.PrefetchScalarGridSpec(
            num_scalar_prefetch=0,
            grid=grid,
            in_specs=[
                pl.BlockSpec((tb, state_dim), lambda i: (i, 0)),
                resident(w1.shape), resident(b1.shape),
                resident(w2.shape), resident(b2.shape),
                resident(w3p.shape), resident(b3p.shape),
            ],
            out_specs=pl.BlockSpec((tb, n_pad), lambda i: (i, 0)),
        ),
        compiler_params=pltpu.CompilerParams(
            dimension_semantics=("parallel",)),
        cost_estimate=pl.CostEstimate(
            flops=flops,
            transcendentals=transcendentals,
            bytes_accessed=bytes_accessed),
    )(state, w1, b1, w2, b2, w3p, b3p)

    # Lane-dense padded store in the kernel; slice back to the logical width.
    return out_padded[:, :action_dim]


def init_params(key, state_dim, action_dim):
    """Deterministic synthetic init matching nn.Linear shapes.
    PyTorch fcN.weight is (out, in); we store the transpose (in, out)."""
    hidden = 16
    ks = jax.random.split(key, 6)

    def linear(kw, kb, fan_in, fan_out):
        bound = 1.0 / jnp.sqrt(fan_in)
        w = jax.random.uniform(kw, (fan_in, fan_out), jnp.float32, -bound, bound)
        b = jax.random.uniform(kb, (1, fan_out), jnp.float32, -bound, bound)
        return w, b

    w1, b1 = linear(ks[0], ks[1], state_dim, hidden)
    w2, b2 = linear(ks[2], ks[3], hidden, hidden)
    w3, b3 = linear(ks[4], ks[5], hidden, action_dim)
    return w1, b1, w2, b2, w3, b3


if __name__ == "__main__":
    key = jax.random.PRNGKey(0)
    k_state, k_params = jax.random.split(key)

    # Small demo shapes; B=200 exercises a 2-tile grid with a clipped final
    # block (tb=104 -> blocks of 104 and 96 valid rows) without any HBM pad.
    batch = 200
    state_dim = 12
    action_dim = 5

    state = jax.random.normal(k_state, (batch, state_dim), jnp.float32)
    w1, b1, w2, b2, w3, b3 = init_params(k_params, state_dim, action_dim)

    # One-time param prep (outside the jitted forward).
    w3p, b3p = pad_action_params(w3, b3)

    probs = actor_discrete_forward(state, w1, b1, w2, b2, w3p, b3p,
                                   action_dim=action_dim)
    probs = jax.block_until_ready(probs)

    # Pure-JAX reference of the same forward pass.
    h = jnp.maximum(state @ w1 + b1, 0.0)
    h = jnp.maximum(h @ w2 + b2, 0.0)
    ref = jax.nn.softmax(h @ w3 + b3, axis=1)

    assert probs.shape == (batch, action_dim)
    # Exact normalization in-kernel -> tight tolerances.
    assert jnp.allclose(jnp.sum(probs, axis=1), 1.0, atol=1e-5)
    assert jnp.allclose(probs, ref, atol=1e-5, rtol=1e-5)

    print("KERNEL_OK")
</pallas_src>

<mosaic_0001>
module attributes {stable_mosaic.version = 11 : i64} {
  func.func @actor_discrete_kernel(%arg0: i32, %arg1: memref<104x12xf32, #tpu.memory_space<vmem>>, %arg2: memref<12x16xf32, #tpu.memory_space<vmem>>, %arg3: memref<1x16xf32, #tpu.memory_space<vmem>>, %arg4: memref<16x16xf32, #tpu.memory_space<vmem>>, %arg5: memref<1x16xf32, #tpu.memory_space<vmem>>, %arg6: memref<16x128xf32, #tpu.memory_space<vmem>>, %arg7: memref<1x128xf32, #tpu.memory_space<vmem>>, %arg8: memref<104x128xf32, #tpu.memory_space<vmem>>) attributes {dimension_semantics = [#tpu.dimension_semantics<parallel>], iteration_bounds = array<i64: 2>, scalar_prefetch = 0 : i64, scratch_operands = 0 : i64, tpu.core_type = #tpu.core_type<tc>, window_params = [{transform_indices = @transform_0, window_bounds = array<i64: 104, 12>}, {pipeline_mode = #tpu.pipeline_mode<synchronous>, transform_indices = @transform_1, window_bounds = array<i64: 12, 16>}, {pipeline_mode = #tpu.pipeline_mode<synchronous>, transform_indices = @transform_2, window_bounds = array<i64: 1, 16>}, {pipeline_mode = #tpu.pipeline_mode<synchronous>, transform_indices = @transform_3, window_bounds = array<i64: 16, 16>}, {pipeline_mode = #tpu.pipeline_mode<synchronous>, transform_indices = @transform_4, window_bounds = array<i64: 1, 16>}, {pipeline_mode = #tpu.pipeline_mode<synchronous>, transform_indices = @transform_5, window_bounds = array<i64: 16, 128>}, {pipeline_mode = #tpu.pipeline_mode<synchronous>, transform_indices = @transform_6, window_bounds = array<i64: 1, 128>}, {transform_indices = @transform_7, window_bounds = array<i64: 104, 128>}]} {
    %c0 = arith.constant 0 : index
    %c0_0 = arith.constant 0 : index
    %0 = vector.load %arg1[%c0, %c0_0] : memref<104x12xf32, #tpu.memory_space<vmem>>, vector<104x12xf32>
    %c0_1 = arith.constant 0 : index
    %c0_2 = arith.constant 0 : index
    %1 = vector.load %arg2[%c0_1, %c0_2] : memref<12x16xf32, #tpu.memory_space<vmem>>, vector<12x16xf32>
    %cst = arith.constant dense<0.000000e+00> : vector<104x16xf32>
    %2 = tpu.matmul %0, %1, %cst {dimension_numbers = #tpu.dot_dimension_numbers<[1], [0], [0], [1], [0, 0, 1, 1], [], []>} : vector<104x12xf32>, vector<12x16xf32>, vector<104x16xf32> -> vector<104x16xf32>
    %c0_3 = arith.constant 0 : index
    %c0_4 = arith.constant 0 : index
    %3 = vector.load %arg3[%c0_3, %c0_4] : memref<1x16xf32, #tpu.memory_space<vmem>>, vector<1x16xf32>
    %4 = vector.broadcast %3 : vector<1x16xf32> to vector<104x16xf32>
    %5 = arith.addf %2, %4 : vector<104x16xf32>
    %cst_5 = arith.constant 0.000000e+00 : f32
    %6 = vector.broadcast %cst_5 : f32 to vector<104x16xf32>
    %7 = arith.maximumf %5, %6 : vector<104x16xf32>
    %c0_6 = arith.constant 0 : index
    %c0_7 = arith.constant 0 : index
    %8 = vector.load %arg4[%c0_6, %c0_7] : memref<16x16xf32, #tpu.memory_space<vmem>>, vector<16x16xf32>
    %cst_8 = arith.constant dense<0.000000e+00> : vector<104x16xf32>
    %9 = tpu.matmul %7, %8, %cst_8 {dimension_numbers = #tpu.dot_dimension_numbers<[1], [0], [0], [1], [0, 0, 1, 1], [], []>} : vector<104x16xf32>, vector<16x16xf32>, vector<104x16xf32> -> vector<104x16xf32>
    %c0_9 = arith.constant 0 : index
    %c0_10 = arith.constant 0 : index
    %10 = vector.load %arg5[%c0_9, %c0_10] : memref<1x16xf32, #tpu.memory_space<vmem>>, vector<1x16xf32>
    %11 = vector.broadcast %10 : vector<1x16xf32> to vector<104x16xf32>
    %12 = arith.addf %9, %11 : vector<104x16xf32>
    %cst_11 = arith.constant 0.000000e+00 : f32
    %13 = vector.broadcast %cst_11 : f32 to vector<104x16xf32>
    %14 = arith.maximumf %12, %13 : vector<104x16xf32>
    %c0_12 = arith.constant 0 : index
    %c0_13 = arith.constant 0 : index
    %15 = vector.load %arg6[%c0_12, %c0_13] : memref<16x128xf32, #tpu.memory_space<vmem>>, vector<16x128xf32>
    %cst_14 = arith.constant dense<0.000000e+00> : vector<104x128xf32>
    %16 = tpu.matmul %14, %15, %cst_14 {dimension_numbers = #tpu.dot_dimension_numbers<[1], [0], [0], [1], [0, 0, 1, 1], [], []>} : vector<104x16xf32>, vector<16x128xf32>, vector<104x128xf32> -> vector<104x128xf32>
    %c0_15 = arith.constant 0 : index
    %c0_16 = arith.constant 0 : index
    %17 = vector.load %arg7[%c0_15, %c0_16] : memref<1x128xf32, #tpu.memory_space<vmem>>, vector<1x128xf32>
    %18 = vector.broadcast %17 : vector<1x128xf32> to vector<104x128xf32>
    %19 = arith.addf %16, %18 : vector<104x128xf32>
    %cst_17 = arith.constant dense<0xFF800000> : vector<104xf32>
    %20 = vector.multi_reduction <maximumf>, %19, %cst_17 [1] : vector<104x128xf32> to vector<104xf32>
    %21 = vector.shape_cast %20 : vector<104xf32> to vector<104x1xf32>
    %22 = vector.broadcast %21 : vector<104x1xf32> to vector<104x128xf32>
    %23 = arith.subf %19, %22 : vector<104x128xf32>
    %24 = math.exp %23 : vector<104x128xf32>
    %cst_18 = arith.constant dense<0.000000e+00> : vector<104xf32>
    %25 = vector.multi_reduction <add>, %24, %cst_18 [1] : vector<104x128xf32> to vector<104xf32>
    %26 = vector.shape_cast %25 : vector<104xf32> to vector<104x1xf32>
    %27 = vector.broadcast %26 : vector<104x1xf32> to vector<104x128xf32>
    %28 = arith.divf %24, %27 : vector<104x128xf32>
    %c0_19 = arith.constant 0 : index
    %c0_20 = arith.constant 0 : index
    %29 = vector.load %arg8[%c0_19, %c0_20] : memref<104x128xf32, #tpu.memory_space<vmem>>, vector<104x128xf32>
    tpu.vector_store %arg8[%c0_19, %c0_20], %28 {strides = array<i32>} : memref<104x128xf32, #tpu.memory_space<vmem>>, vector<104x128xf32>,
    return
  }
  func.func @transform_0(%arg0: i32) -> (i32, i32) {
    %c0_i32 = arith.constant 0 : i32
    %c0_i32_0 = arith.constant 0 : i32
    return %arg0, %c0_i32 : i32, i32
  }
  func.func @transform_1(%arg0: i32) -> (i32, i32) {
    %c0_i32 = arith.constant 0 : i32
    %c0_i32_0 = arith.constant 0 : i32
    %c0_i32_1 = arith.constant 0 : i32
    return %c0_i32, %c0_i32_0 : i32, i32
  }
  func.func @transform_2(%arg0: i32) -> (i32, i32) {
    %c0_i32 = arith.constant 0 : i32
    %c0_i32_0 = arith.constant 0 : i32
    %c0_i32_1 = arith.constant 0 : i32
    return %c0_i32, %c0_i32_0 : i32, i32
  }
  func.func @transform_3(%arg0: i32) -> (i32, i32) {
    %c0_i32 = arith.constant 0 : i32
    %c0_i32_0 = arith.constant 0 : i32
    %c0_i32_1 = arith.constant 0 : i32
    return %c0_i32, %c0_i32_0 : i32, i32
  }
  func.func @transform_4(%arg0: i32) -> (i32, i32) {
    %c0_i32 = arith.constant 0 : i32
    %c0_i32_0 = arith.constant 0 : i32
    %c0_i32_1 = arith.constant 0 : i32
    return %c0_i32, %c0_i32_0 : i32, i32
  }
  func.func @transform_5(%arg0: i32) -> (i32, i32) {
    %c0_i32 = arith.constant 0 : i32
    %c0_i32_0 = arith.constant 0 : i32
    %c0_i32_1 = arith.constant 0 : i32
    return %c0_i32, %c0_i32_0 : i32, i32
  }
  func.func @transform_6(%arg0: i32) -> (i32, i32) {
    %c0_i32 = arith.constant 0 : i32
    %c0_i32_0 = arith.constant 0 : i32
    %c0_i32_1 = arith.constant 0 : i32
    return %c0_i32, %c0_i32_0 : i32, i32
  }
  func.func @transform_7(%arg0: i32) -> (i32, i32) {
    %c0_i32 = arith.constant 0 : i32
    %c0_i32_0 = arith.constant 0 : i32
    return %arg0, %c0_i32 : i32, i32
  }
}

</mosaic_0001>

<bundles_post_ra>
// kernel: actor_discrete_forward.1
= control target key start
LH: loop header
LB: loop body
LE: loop exit
PB: predicated region body
PF: predicated region fallthrough
CT: control target
= control target key end

     0   :  { %s1803_s24 = smov 0   ;;  %s1805_s25 = smov 0   ;;  %s2206_s0 = inlined_call_operand.vmem [shape: f32[200,12], index: 0, kind: input, shape index: {}]   ;;  %s2207_s1 = inlined_call_operand.vmem [shape: f32[12,16], index: 1, kind: input, shape index: {}]   ;;  %s2208_s2 = inlined_call_operand.vmem [shape: f32[1,16], index: 2, kind: input, shape index: {}]   ;;  %s2209_s3 = inlined_call_operand.vmem [shape: f32[16,16], index: 3, kind: input, shape index: {}]   ;;  %s2210_s4 = inlined_call_operand.vmem [shape: f32[1,16], index: 4, kind: input, shape index: {}]   ;;  %s2211_s5 = inlined_call_operand.vmem [shape: f32[16,128], index: 5, kind: input, shape index: {}]   ;;  %s2212_s6 = inlined_call_operand.vmem [shape: f32[1,128], index: 6, kind: input, shape index: {}]   ;;  %s2213_s7 = inlined_call_operand.vmem [shape: f32[200,128], index: 7, kind: output, shape index: {}]  }
   0x1   :  { %s1807_s26 = smov 0  }
   0x2 LB: > { %s1816_s27 = sadd.s32 4294967295, %s1725_s26   ;;  %s1818_s28 = sadd.s32 1, %s1725_s26   ;;  %s1725_s26 = sphi %s1807_s26, %s2220_s26   ;;  %s1721_s25 = sphi %s1805_s25, %s2219_s25   ;;  %s1717_s24 = sphi %s1803_s24, %s2218_s24  }
   0x3   : > { %s173_s29 = ssub.s32 %s1725_s26, %s1818_s28  ;;  %s176_s30 = sadd.s32 1, %s1721_s25 }
   0x4   : > { %p174_p0 = scmp.eq.s32.totalorder %s173_s29, 0  ;;  %p186_p1 = scmp.ne.s32.totalorder %s1721_s25, %s1717_s24 }
   0x5   : > { %p187_p2 = scmp.eq.s32.totalorder %s1816_s27, 1  ;;  %p1277_p3 = scmp.ge.s32.totalorder %s1725_s26, 1 }
   0x6   : > { %s1826_s8 = scalar_select %p174_p0, %s1721_s25, %s176_s30  }
   0x7   : > { %p1828_p4 = por %p187_p2, %p186_p1  ;;  %p246_p5 = scmp.lt.s32.totalorder %s1725_s26, 3 }
   0x9   : > { %p247_p6 = pnand %p1277_p3, %p246_p5 }
   0xa   : > { %v313_v0 = vld [vmem:[%s2207_s1] sm:$0xff] (!%p247_p6)  ;;  %v314_v1 = vld [vmem:[%s2207_s1 + $0x8] sm:$0xf] (!%p247_p6)  ;;  %vm362_vm0 = vcmask (!%p247_p6), 1043456   ;;  %v1759_v2 = vmov (!%p247_p6), 0.0|0.0   ;;  %vm1760_vm1 = vmmov (!%p247_p6), 1  }
   0xb   : > { %250 = sbr.rel (%p247_p6) target bundleno = 1091 (0x443), region = 48  ;;  %1509 = vmatprep.subr.bf16.mxu0 (!%p247_p6), %v1759_v2  ;;  %v1510_v3 = vpack.c.bf16 (!%p247_p6), %v314_v1, %v313_v0  ;;  %vm1511_vm2 = vmpackc.low (!%p247_p6), %vm362_vm0, %vm1760_vm1  ;;  %1519 = vmatprep.subr.bf16.mxu1 (!%p247_p6), %v1759_v2  ;;  %vm1761_vm3 = vmmov (!%p247_p6), 0   ;;  %v1762_v4 = vmov (!%p247_p6), 0.0   ;;  %v509_v5 = vld [vmem:[%s2209_s3] sm:$0xff] (!%p247_p6)  ;;  %v510_v6 = vld [vmem:[%s2209_s3 + $0x8] sm:$0xff] (!%p247_p6)  ;;  %vm322_vm4 = vcmask (!%p247_p6), 97280  }
   0xc   : > { %s1839_s14 = smul.u32 (!%p247_p6), 13, %s1816_s27  ;;  %1384 = vmatprep.mubr.msk.f32.mxu0 (!%p247_p6), %vm1761_vm3, %v1762_v4  ;;  %1405 = vmatprep.mubr.msk.f32.mxu1 (!%p247_p6), %vm1761_vm3, %v1762_v4  ;;  %v1514_v8 = vpack.c.bf16 (!%p247_p6), %v510_v6, %v509_v5  ;;  %v701_v21 = vld [vmem:[%s2211_s5] sm:$0xff] (!%p247_p6)  ;;  %v702_v22 = vld [vmem:[%s2211_s5 + $0x8] sm:$0xff] (!%p247_p6)  ;;  %vm518_vm5 = vcmask (!%p247_p6), 130048   ;;  %s278_s18 = sand.u32 (!%p247_p6), 1, %s1717_s24  }
   0xd   : > { %1512 = vmatpush3.bf16.msk.msra.mxu0 (!%p247_p6), %vm1511_vm2, %v1510_v3  ;;  %1520 = vmatpush3.bf16.msk.msra.mxu1 (!%p247_p6), %vm1511_vm2, %v1510_v3  ;;  %v1517_v23 = vpack.c.bf16 (!%p247_p6), %v702_v22, %v701_v21  ;;  %v1919_v24 = vld [vmem:[%s2208_s2] ss:$0 sm:$0xff] (!%p247_p6)  ;;  %s1521_s19 = smul.u32 (!%p247_p6), 104, %s278_s18 }
   0xe   : > { %p286_p7 = scmp.lt.s32.totalorder (!%p247_p6), %s1839_s14, 24  ;;  %1513 = vmatprep.subr.bf16.mxu1 (!%p247_p6), %v1759_v2  ;;  %1516 = vmatprep.subr.bf16.mxu0 (!%p247_p6), %v1759_v2 }
  0x12   : > { %s287_s15 = scalar_select %p286_p7, %s1839_s14, 24 }
  0x13   : > { %s1017_s24 = ssub.s32 (%p1828_p4), 25, %s1839_s14  ;;  %s1334_s21 = smul.u32 (%p1828_p4), 104, %s1816_s27 }
  0x14   : > { %s1278_s20 = sshll.u32 %s287_s15, 3  ;;  %p1018_p8 = scmp.lt.s32.totalorder (%p1828_p4), %s1017_s24, 13 }
  0x15   : > { %s1856_s23 = scalar_lea.vmem %s2206_s0, %s1278_s20  ;;  %s2090_s20 = scalar_lea.vmem [#allocation2], %s1521_s19  }
  0x16   : > { %v300_v7 = vld [vmem:[%s1856_s23] sm:$0xff]  ;;  %v301_v9 = vld [vmem:[%s1856_s23 + $0x8] sm:$0xff]  ;;  %v307_v10 = vld [vmem:[%s1856_s23 + $0x38] sm:$0xff]  ;;  %s2124_s26 = scalar_lea.vmem (%p1828_p4), %s2213_s7, %s1334_s21  }
  0x17   : > { %1385 = vmatmul.mubr.msk.f32.vlgmr.msra.gmra.mrb[0].mxu0 %vm322_vm4, %v300_v7  ;;  %1406 = vmatmul.mubr.msk.f32.vlgmr.msra.gmra.mrb[0].mxu1 %vm322_vm4, %v307_v10  ;;  %v308_v11 = vld [vmem:[%s1856_s23 + $0x40] sm:$0xff]  ;;  %v302_v12 = vld [vmem:[%s1856_s23 + $0x10] sm:$0xff]  ;;  %v309_v13 = vld [vmem:[%s1856_s23 + $0x48] sm:$0xff] }
  0x18   : > { %1387 = vmatprep.mubr.msk.f32.mxu0 %vm1761_vm3, %v1762_v4  ;;  %1408 = vmatprep.mubr.msk.f32.mxu1 %vm1761_vm3, %v1762_v4  ;;  %v303_v14 = vld [vmem:[%s1856_s23 + $0x18] sm:$0xff]  ;;  %v310_v15 = vld [vmem:[%s1856_s23 + $0x50] sm:$0xff]  ;;  %v304_v16 = vld [vmem:[%s1856_s23 + $0x20] sm:$0xff] }
  0x19   : > { %1515 = vmatpush3.bf16.msra.mxu1 %v1514_v8  ;;  %v311_v17 = vld [vmem:[%s1856_s23 + $0x58] sm:$0xff]  ;;  %v305_v18 = vld [vmem:[%s1856_s23 + $0x28] sm:$0xff]  ;;  %v312_v19 = vld [vmem:[%s1856_s23 + $0x60] sm:$0xff]  ;;  %1518 = vmatpush3.bf16.msra.mxu0 %v1517_v23 }
  0x1a   : > { %v306_v20 = vld [vmem:[%s1856_s23 + $0x30] sm:$0xff] }
  0x1b   : > { %1388 = vmatmul.mubr.msk.f32.gmra.mrb[2].mxu0 %vm322_vm4, %v301_v9  ;;  %1409 = vmatmul.mubr.msk.f32.gmra.mrb[2].mxu1 %vm322_vm4, %v308_v11 }
  0x1c   : > { %1390 = vmatprep.mubr.msk.f32.mxu0 %vm1761_vm3, %v1762_v4  ;;  %1411 = vmatprep.mubr.msk.f32.mxu1 %vm1761_vm3, %v1762_v4 }
  0x1f   : > { %1391 = vmatmul.mubr.msk.f32.gmra.mrb[4].mxu0 %vm322_vm4, %v302_v12  ;;  %1412 = vmatmul.mubr.msk.f32.gmra.mrb[4].mxu1 %vm322_vm4, %v309_v13 }
  0x20   : > { %1393 = vmatprep.mubr.msk.f32.mxu0 %vm1761_vm3, %v1762_v4  ;;  %1414 = vmatprep.mubr.msk.f32.mxu1 %vm1761_vm3, %v1762_v4 }
  0x23   : > { %1394 = vmatmul.mubr.msk.f32.gmra.mrb[6].mxu0 %vm322_vm4, %v303_v14  ;;  %1415 = vmatmul.mubr.msk.f32.gmra.mrb[6].mxu1 %vm322_vm4, %v310_v15  ;;  %v1974_v14 = vld [vmem:[%s2210_s4] ss:$0 sm:$0xff] }
  0x24   : > { %1396 = vmatprep.mubr.msk.f32.mxu0 %vm1761_vm3, %v1762_v4  ;;  %1417 = vmatprep.mubr.msk.f32.mxu1 %vm1761_vm3, %v1762_v4 }
  0x27   : > { %1397 = vmatmul.mubr.msk.f32.gmra.mrb[8].mxu0 %vm322_vm4, %v304_v16  ;;  %1418 = vmatmul.mubr.msk.f32.gmra.mrb[8].mxu1 %vm322_vm4, %v311_v17 }
  0x28   : > { %1399 = vmatprep.mubr.msk.f32.mxu0 %vm1761_vm3, %v1762_v4  ;;  %1420 = vmatprep.mubr.msk.f32.mxu1 %vm1761_vm3, %v1762_v4 }
  0x2b   : > { %1400 = vmatmul.mubr.msk.f32.gmra.mrb[10].mxu0 %vm322_vm4, %v305_v18  ;;  %1421 = vmatmul.mubr.msk.f32.gmra.mrb[10].mxu1 %vm322_vm4, %v312_v19 }
  0x2c   : > { %1402 = vmatprep.mubr.msk.f32.mxu0 %vm1761_vm3, %v1762_v4  ;;  %1427 = vmatprep.mubr.msk.f32.mxu1 %vm1761_vm3, %v1762_v4 }
  0x2f   : > { %1403 = vmatmul.mubr.msk.f32.gmra.mrb[12].mxu0 %vm322_vm4, %v306_v20 }
  0x30   : > { %1470 = vmatprep.mubr.msk.f32.mxu0 %vm1761_vm3, %v1762_v4 }
  0xea   : > { %v432_v25 = vpop.f32.mrb[0].mxu0  ;;  %v467_v28 = vpop.f32.mrb[0].mxu1 }
  0xeb   : > { %v433_v26 = vadd.f32 %v1919_v24, %v432_v25  ;;  %v1386_v27 = vpop.f32.mrb[1].mxu0  ;;  %v1407_v30 = vpop.f32.mrb[1].mxu1  ;;  %v468_v0 = vadd.f32 %v1919_v24, %v467_v28 }
  0xed   : > { %v496_v29 = vmax.f32 %v433_v26, 0.0  ;;  %v503_v2 = vmax.f32 %v468_v0, 0.0 }
  0xee   : > { %v437_v31 = vpop.f32.mrb[2].mxu0  ;;  %v472_v34 = vpop.f32.mrb[2].mxu1 }
  0xef   : > { %v438_v32 = vadd.f32 %v1919_v24, %v437_v31  ;;  %v1389_v33 = vpop.f32.mrb[3].mxu0  ;;  %1428 = vmatmul.mubr.msk.f32.vlgmr.msra.gmra.mrb[12].mxu1 %vm518_vm5, %v496_v29  ;;  %v1410_v36 = vpop.f32.mrb[3].mxu1  ;;  %v473_v3 = vadd.f32 %v1919_v24, %v472_v34 }
  0xf0   : > { %1430 = vmatprep.mubr.msk.f32.mxu1 %vm1761_vm3, %v1762_v4 }
  0xf1   : > { %v497_v35 = vmax.f32 %v438_v32, 0.0  ;;  %v504_v5 = vmax.f32 %v473_v3, 0.0  ;;  %v1308_v3 = vld [vmem:[%s2212_s6] ss:$0 sm:$0xff] }
  0xf2   : > { %v442_v37 = vpop.f32.mrb[4].mxu0  ;;  %v477_v40 = vpop.f32.mrb[4].mxu1 }
  0xf3   : > { %v443_v38 = vadd.f32 %v1919_v24, %v442_v37  ;;  %v1392_v39 = vpop.f32.mrb[5].mxu0  ;;  %1431 = vmatmul.mubr.msk.f32.gmra.mrb[14].mxu1 %vm518_vm5, %v497_v35  ;;  %v1413_v42 = vpop.f32.mrb[5].mxu1  ;;  %v478_v6 = vadd.f32 %v1919_v24, %v477_v40 }
  0xf4   : > { %1433 = vmatprep.mubr.msk.f32.mxu1 %vm1761_vm3, %v1762_v4 }
  0xf5   : > { %v498_v41 = vmax.f32 %v443_v38, 0.0  ;;  %v505_v7 = vmax.f32 %v478_v6, 0.0 }
  0xf6   : > { %v447_v43 = vpop.f32.mrb[6].mxu0  ;;  %v482_v46 = vpop.f32.mrb[6].mxu1 }
  0xf7   : > { %v448_v44 = vadd.f32 %v1919_v24, %v447_v43  ;;  %v1395_v45 = vpop.f32.mrb[7].mxu0  ;;  %1434 = vmatmul.mubr.msk.f32.gmra.mrb[16].mxu1 %vm518_vm5, %v498_v41  ;;  %v1416_v48 = vpop.f32.mrb[7].mxu1  ;;  %v483_v8 = vadd.f32 %v1919_v24, %v482_v46 }
  0xf8   : > { %1436 = vmatprep.mubr.msk.f32.mxu1 %vm1761_vm3, %v1762_v4 }
  0xf9   : > { %v499_v47 = vmax.f32 %v448_v44, 0.0  ;;  %v506_v9 = vmax.f32 %v483_v8, 0.0 }
  0xfa   : > { %v452_v49 = vpop.f32.mrb[8].mxu0  ;;  %v487_v52 = vpop.f32.mrb[8].mxu1 }
  0xfb   : > { %v453_v50 = vadd.f32 %v1919_v24, %v452_v49  ;;  %v1398_v51 = vpop.f32.mrb[9].mxu0  ;;  %1437 = vmatmul.mubr.msk.f32.gmra.mrb[18].mxu1 %vm518_vm5, %v499_v47  ;;  %v1419_v54 = vpop.f32.mrb[9].mxu1  ;;  %v488_v10 = vadd.f32 %v1919_v24, %v487_v52 }
  0xfc   : > { %1439 = vmatprep.mubr.msk.f32.mxu1 %vm1761_vm3, %v1762_v4 }
  0xfd   : > { %v500_v53 = vmax.f32 %v453_v50, 0.0  ;;  %v507_v11 = vmax.f32 %v488_v10, 0.0 }
  0xfe   : > { %v457_v55 = vpop.f32.mrb[10].mxu0  ;;  %v492_v58 = vpop.f32.mrb[10].mxu1 }
  0xff   : > { %v458_v56 = vadd.f32 %v1919_v24, %v457_v55  ;;  %v1401_v57 = vpop.f32.mrb[11].mxu0  ;;  %1440 = vmatmul.mubr.msk.f32.gmra.mrb[20].mxu1 %vm518_vm5, %v500_v53  ;;  %v1422_v60 = vpop.f32.mrb[11].mxu1  ;;  %v493_v12 = vadd.f32 %v1919_v24, %v492_v58 }
 0x100   : > { %1442 = vmatprep.mubr.msk.f32.mxu1 %vm1761_vm3, %v1762_v4 }
 0x101   : > { %v501_v59 = vmax.f32 %v458_v56, 0.0  ;;  %v508_v13 = vmax.f32 %v493_v12, 0.0 }
 0x102   : > { %v462_v61 = vpop.f32.mrb[12].mxu0 }
 0x103   : > { %v463_v62 = vadd.f32 %v1919_v24, %v462_v61  ;;  %v1404_v63 = vpop.f32.mrb[13].mxu0  ;;  %1443 = vmatmul.mubr.msk.f32.gmra.mrb[22].mxu1 %vm518_vm5, %v501_v59 }
 0x104   : > { %1445 = vmatprep.mubr.msk.f32.mxu1 %vm1761_vm3, %v1762_v4 }
 0x105   : > { %v502_v1 = vmax.f32 %v463_v62, 0.0 }
 0x107   : > { %1446 = vmatmul.mubr.msk.f32.gmra.mrb[24].mxu1 %vm518_vm5, %v502_v1 }
 0x108   : > { %1448 = vmatprep.mubr.msk.f32.mxu1 %vm1761_vm3, %v1762_v4 }
 0x10b   : > { %1449 = vmatmul.mubr.msk.f32.gmra.mrb[26].mxu1 %vm518_vm5, %v503_v2 }
 0x10c   : > { %1451 = vmatprep.mubr.msk.f32.mxu1 %vm1761_vm3, %v1762_v4 }
 0x10f   : > { %1452 = vmatmul.mubr.msk.f32.gmra.mrb[28].mxu1 %vm518_vm5, %v504_v5 }
 0x110   : > { %1454 = vmatprep.mubr.msk.f32.mxu1 %vm1761_vm3, %v1762_v4 }
 0x113   : > { %1455 = vmatmul.mubr.msk.f32.gmra.mrb[30].mxu1 %vm518_vm5, %v505_v7 }
 0x114   : > { %1457 = vmatprep.mubr.msk.f32.mxu1 %vm1761_vm3, %v1762_v4 }
 0x117   : > { %1458 = vmatmul.mubr.msk.f32.gmra.mrb[32].mxu1 %vm518_vm5, %v506_v9 }
 0x118   : > { %1460 = vmatprep.mubr.msk.f32.mxu1 %vm1761_vm3, %v1762_v4 }
 0x11b   : > { %1461 = vmatmul.mubr.msk.f32.gmra.mrb[34].mxu1 %vm518_vm5, %v507_v11 }
 0x11c   : > { %1463 = vmatprep.mubr.msk.f32.mxu1 %vm1761_vm3, %v1762_v4 }
 0x11f   : > { %1464 = vmatmul.mubr.msk.f32.gmra.mrb[36].mxu1 %vm518_vm5, %v508_v13 }
 0x1c2   : > { %v624_v15 = vpop.f32.mrb[12].mxu1 }
 0x1c3   : > { %v625_v16 = vadd.f32 %v1974_v14, %v624_v15  ;;  %v1429_v17 = vpop.f32.mrb[13].mxu1 }
 0x1c5   : > { %v688_v18 = vmax.f32 %v625_v16, 0.0 }
 0x1c6   : > { %v629_v19 = vpop.f32.mrb[14].mxu1 }
 0x1c7   : > { %v630_v20 = vadd.f32 %v1974_v14, %v629_v19  ;;  %v1432_v21 = vpop.f32.mrb[15].mxu1  ;;  %1471 = vmatmul.mubr.msk.f32.vlgmr.msra.gmra.mrb[14].mxu0 %vm518_vm5, %v688_v18 }
 0x1c8   : > { %1473 = vmatprep.mubr.msk.f32.mxu0 %vm1761_vm3, %v1762_v4 }
 0x1c9   : > { %v689_v22 = vmax.f32 %v630_v20, 0.0 }
 0x1ca   : > { %v634_v23 = vpop.f32.mrb[16].mxu1 }
 0x1cb   : > { %v635_v24 = vadd.f32 %v1974_v14, %v634_v23  ;;  %v1435_v25 = vpop.f32.mrb[17].mxu1  ;;  %1474 = vmatmul.mubr.msk.f32.gmra.mrb[16].mxu0 %vm518_vm5, %v689_v22 }
 0x1cc   : > { %1476 = vmatprep.mubr.msk.f32.mxu0 %vm1761_vm3, %v1762_v4 }
 0x1cd   : > { %v690_v26 = vmax.f32 %v635_v24, 0.0 }
 0x1ce   : > { %v639_v27 = vpop.f32.mrb[18].mxu1 }
 0x1cf   : > { %v640_v28 = vadd.f32 %v1974_v14, %v639_v27  ;;  %v1438_v29 = vpop.f32.mrb[19].mxu1  ;;  %1477 = vmatmul.mubr.msk.f32.gmra.mrb[18].mxu0 %vm518_vm5, %v690_v26 }
 0x1d0   : > { %1479 = vmatprep.mubr.msk.f32.mxu0 %vm1761_vm3, %v1762_v4 }
 0x1d1   : > { %v691_v30 = vmax.f32 %v640_v28, 0.0 }
 0x1d2   : > { %v644_v31 = vpop.f32.mrb[20].mxu1 }
 0x1d3   : > { %v645_v32 = vadd.f32 %v1974_v14, %v644_v31  ;;  %v1441_v33 = vpop.f32.mrb[21].mxu1  ;;  %1480 = vmatmul.mubr.msk.f32.gmra.mrb[20].mxu0 %vm518_vm5, %v691_v30 }
 0x1d4   : > { %1482 = vmatprep.mubr.msk.f32.mxu0 %vm1761_vm3, %v1762_v4 }
 0x1d5   : > { %v692_v34 = vmax.f32 %v645_v32, 0.0 }
 0x1d6   : > { %v649_v35 = vpop.f32.mrb[22].mxu1 }
 0x1d7   : > { %v650_v36 = vadd.f32 %v1974_v14, %v649_v35  ;;  %v1444_v37 = vpop.f32.mrb[23].mxu1  ;;  %1483 = vmatmul.mubr.msk.f32.gmra.mrb[22].mxu0 %vm518_vm5, %v692_v34 }
 0x1d8   : > { %1485 = vmatprep.mubr.msk.f32.mxu0 %vm1761_vm3, %v1762_v4 }
 0x1d9   : > { %v693_v38 = vmax.f32 %v650_v36, 0.0 }
 0x1da   : > { %v654_v39 = vpop.f32.mrb[24].mxu1 }
 0x1db   : > { %v655_v40 = vadd.f32 %v1974_v14, %v654_v39  ;;  %v1447_v41 = vpop.f32.mrb[25].mxu1  ;;  %1486 = vmatmul.mubr.msk.f32.gmra.mrb[24].mxu0 %vm518_vm5, %v693_v38 }
 0x1dc   : > { %1488 = vmatprep.mubr.msk.f32.mxu0 %vm1761_vm3, %v1762_v4 }
 0x1dd   : > { %v694_v42 = vmax.f32 %v655_v40, 0.0 }
 0x1de   : > { %v659_v43 = vpop.f32.mrb[26].mxu1 }
 0x1df   : > { %v660_v44 = vadd.f32 %v1974_v14, %v659_v43  ;;  %v1450_v45 = vpop.f32.mrb[27].mxu1  ;;  %1489 = vmatmul.mubr.msk.f32.gmra.mrb[26].mxu0 %vm518_vm5, %v694_v42 }
 0x1e0   : > { %1491 = vmatprep.mubr.msk.f32.mxu0 %vm1761_vm3, %v1762_v4 }
 0x1e1   : > { %v695_v46 = vmax.f32 %v660_v44, 0.0 }
 0x1e2   : > { %v664_v47 = vpop.f32.mrb[28].mxu1 }
 0x1e3   : > { %v665_v48 = vadd.f32 %v1974_v14, %v664_v47  ;;  %v1453_v49 = vpop.f32.mrb[29].mxu1  ;;  %1492 = vmatmul.mubr.msk.f32.gmra.mrb[28].mxu0 %vm518_vm5, %v695_v46 }
 0x1e4   : > { %1494 = vmatprep.mubr.msk.f32.mxu0 %vm1761_vm3, %v1762_v4 }
 0x1e5   : > { %v696_v50 = vmax.f32 %v665_v48, 0.0 }
 0x1e6   : > { %v669_v51 = vpop.f32.mrb[30].mxu1 }
 0x1e7   : > { %v670_v52 = vadd.f32 %v1974_v14, %v669_v51  ;;  %v1456_v53 = vpop.f32.mrb[31].mxu1  ;;  %1495 = vmatmul.mubr.msk.f32.gmra.mrb[30].mxu0 %vm518_vm5, %v696_v50 }
 0x1e8   : > { %1497 = vmatprep.mubr.msk.f32.mxu0 %vm1761_vm3, %v1762_v4 }
 0x1e9   : > { %v697_v54 = vmax.f32 %v670_v52, 0.0 }
 0x1ea   : > { %v674_v55 = vpop.f32.mrb[32].mxu1 }
 0x1eb   : > { %v675_v56 = vadd.f32 %v1974_v14, %v674_v55  ;;  %v1459_v57 = vpop.f32.mrb[33].mxu1  ;;  %1498 = vmatmul.mubr.msk.f32.gmra.mrb[32].mxu0 %vm518_vm5, %v697_v54 }
 0x1ec   : > { %1500 = vmatprep.mubr.msk.f32.mxu0 %vm1761_vm3, %v1762_v4 }
 0x1ed   : > { %v698_v58 = vmax.f32 %v675_v56, 0.0 }
 0x1ee   : > { %v679_v59 = vpop.f32.mrb[34].mxu1 }
 0x1ef   : > { %v680_v60 = vadd.f32 %v1974_v14, %v679_v59  ;;  %v1462_v61 = vpop.f32.mrb[35].mxu1  ;;  %1501 = vmatmul.mubr.msk.f32.gmra.mrb[34].mxu0 %vm518_vm5, %v698_v58 }
 0x1f0   : > { %1503 = vmatprep.mubr.msk.f32.mxu0 %vm1761_vm3, %v1762_v4 }
 0x1f1   : > { %v699_v62 = vmax.f32 %v680_v60, 0.0 }
 0x1f2   : > { %v684_v63 = vpop.f32.mrb[36].mxu1 }
 0x1f3   : > { %v685_v0 = vadd.f32 %v1974_v14, %v684_v63  ;;  %v1465_v1 = vpop.f32.mrb[37].mxu1  ;;  %1504 = vmatmul.mubr.msk.f32.gmra.mrb[36].mxu0 %vm518_vm5, %v699_v62 }
 0x1f4   : > { %1506 = vmatprep.mubr.msk.f32.mxu0 %vm1761_vm3, %v1762_v4 }
 0x1f5   : > { %v700_v2 = vmax.f32 %v685_v0, 0.0 }
 0x1f7   : > { %1507 = vmatmul.mubr.msk.f32.gmra.mrb[38].mxu0 %vm518_vm5, %v700_v2 }
 0x29a   : > { %v815_v5 = vpop.f32.mrb[14].mxu0 }
 0x29b   : > { %v816_v6 = vadd.f32 %v1308_v3, %v815_v5  ;;  %v1472_v7 = vpop.f32.mrb[15].mxu0 }
 0x29d   : > { %879 = vmax.xlane.f32.xlu0 %v816_v6 }
 0x29e   : > { %v820_v8 = vpop.f32.mrb[16].mxu0 }
 0x29f   : > { %v821_v9 = vadd.f32 %v1308_v3, %v820_v8  ;;  %v1475_v10 = vpop.f32.mrb[17].mxu0 }
 0x2a1   : > { %881 = vmax.xlane.f32.xlu0 %v821_v9 }
 0x2a2   : > { %v825_v11 = vpop.f32.mrb[18].mxu0 }
 0x2a3   : > { %v826_v12 = vadd.f32 %v1308_v3, %v825_v11  ;;  %v1478_v13 = vpop.f32.mrb[19].mxu0 }
 0x2a5   : > { %883 = vmax.xlane.f32.xlu1 %v826_v12 }
 0x2a6   : > { %v830_v4 = vpop.f32.mrb[20].mxu0 }
 0x2a7   : > { %v831_v14 = vadd.f32 %v1308_v3, %v830_v4  ;;  %v1481_v15 = vpop.f32.mrb[21].mxu0 }
 0x2a9   : > { %885 = vmax.xlane.f32.xlu1 %v831_v14 }
 0x2aa   : > { %v835_v16 = vpop.f32.mrb[22].mxu0 }
 0x2ab   : > { %v836_v17 = vadd.f32 %v1308_v3, %v835_v16  ;;  %v1484_v18 = vpop.f32.mrb[23].mxu0 }
 0x2ad   : > { %887 = vmax.xlane.f32.xlu0 %v836_v17 }
 0x2ae   : > { %v840_v19 = vpop.f32.mrb[24].mxu0 }
 0x2af   : > { %v841_v20 = vadd.f32 %v1308_v3, %v840_v19  ;;  %v1487_v21 = vpop.f32.mrb[25].mxu0 }
 0x2b1   : > { %889 = vmax.xlane.f32.xlu1 %v841_v20 }
 0x2b2   : > { %v845_v22 = vpop.f32.mrb[26].mxu0 }
 0x2b3   : > { %v846_v23 = vadd.f32 %v1308_v3, %v845_v22  ;;  %v1490_v24 = vpop.f32.mrb[27].mxu0 }
 0x2b5   : > { %891 = vmax.xlane.f32.xlu0 %v846_v23 }
 0x2b6   : > { %v850_v25 = vpop.f32.mrb[28].mxu0 }
 0x2b7   : > { %v851_v26 = vadd.f32 %v1308_v3, %v850_v25  ;;  %v1493_v27 = vpop.f32.mrb[29].mxu0 }
 0x2b9   : > { %893 = vmax.xlane.f32.xlu1 %v851_v26 }
 0x2ba   : > { %v855_v28 = vpop.f32.mrb[30].mxu0 }
 0x2bb   : > { %v2029_v29 = vadd.f32 %v1308_v3, %v855_v28  ;;  %v1496_v30 = vpop.f32.mrb[31].mxu0 }
 0x2bd   : > { %895 = vmax.xlane.f32.xlu0 %v2029_v29 }
 0x2be   : > { %v860_v31 = vpop.f32.mrb[32].mxu0 }
 0x2bf   : > { %v2032_v32 = vadd.f32 %v1308_v3, %v860_v31  ;;  %v1499_v33 = vpop.f32.mrb[33].mxu0 }
 0x2c1   : > { %897 = vmax.xlane.f32.xlu1 %v2032_v32 }
 0x2c2   : > { %v865_v34 = vpop.f32.mrb[34].mxu0 }
 0x2c3   : > { %v2035_v35 = vadd.f32 %v1308_v3, %v865_v34  ;;  %v1502_v36 = vpop.f32.mrb[35].mxu0 }
 0x2c5   : > { %899 = vmax.xlane.f32.xlu0 %v2035_v35 }
 0x2c6   : > { %v870_v37 = vpop.f32.mrb[36].mxu0 }
 0x2c7   : > { %v2038_v38 = vadd.f32 %v1308_v3, %v870_v37  ;;  %v1505_v39 = vpop.f32.mrb[37].mxu0 }
 0x2c9   : > { %901 = vmax.xlane.f32.xlu1 %v2038_v38 }
 0x2ca   : > { %v875_v40 = vpop.f32.mrb[38].mxu0 }
 0x2cb   : > { %v2041_v41 = vadd.f32 %v1308_v3, %v875_v40  ;;  %v1508_v42 = vpop.f32.mrb[39].mxu0 }
 0x2cd   : > { %903 = vmax.xlane.f32.xlu0 %v2041_v41 }
 0x32a   : > { %v880_v43 = vpop.xlane.xlu0 %879 }
 0x32b   : > { %v905_v44 = vsub.f32 %v816_v6, %v880_v43 }
 0x32d   : > { %v918_v45 = vmul.f32 1.442695, %v905_v44 }
 0x32e   : > { %v882_v46 = vpop.xlane.xlu0 %881 }
 0x32f   : > { %1615 = vpow2.f32 %v918_v45  ;;  %v906_v47 = vsub.f32 %v821_v9, %v882_v46 }
 0x331   : > { %v920_v48 = vmul.f32 1.442695, %v906_v47 }
 0x332   : > { %v884_v49 = vpop.xlane.xlu1 %883 }
 0x333   : > { %1617 = vpow2.f32 %v920_v48  ;;  %v907_v50 = vsub.f32 %v826_v12, %v884_v49 }
 0x335   : > { %v922_v51 = vmul.f32 1.442695, %v907_v50 }
 0x336   : > { %v886_v52 = vpop.xlane.xlu1 %885 }
 0x337   : > { %1619 = vpow2.f32 %v922_v51  ;;  %v908_v53 = vsub.f32 %v831_v14, %v886_v52 }
 0x339   : > { %v2044_v54 = vpop.eup %1615  ;;  %v924_v55 = vmul.f32 1.442695, %v908_v53 }
 0x33a   : > { %v888_v56 = vpop.xlane.xlu0 %887  ;;  %944 = vadd.xlane.f32.xlu1 %v2044_v54 }
 0x33b   : > { %1621 = vpow2.f32 %v924_v55  ;;  %v909_v57 = vsub.f32 %v836_v17, %v888_v56 }
 0x33d   : > { %v2047_v58 = vpop.eup %1617  ;;  %v926_v59 = vmul.f32 1.442695, %v909_v57 }
 0x33e   : > { %v890_v60 = vpop.xlane.xlu1 %889  ;;  %946 = vadd.xlane.f32.xlu0 %v2047_v58 }
 0x33f   : > { %1623 = vpow2.f32 %v926_v59  ;;  %v910_v61 = vsub.f32 %v841_v20, %v890_v60 }
 0x341   : > { %v2050_v62 = vpop.eup %1619  ;;  %v928_v63 = vmul.f32 1.442695, %v910_v61 }
 0x342   : > { %v892_v0 = vpop.xlane.xlu0 %891  ;;  %948 = vadd.xlane.f32.xlu1 %v2050_v62 }
 0x343   : > { %1625 = vpow2.f32 %v928_v63  ;;  %v911_v1 = vsub.f32 %v846_v23, %v892_v0 }
 0x345   : > { %v2053_v2 = vpop.eup %1621  ;;  %v930_v3 = vmul.f32 1.442695, %v911_v1 }
 0x346   : > { %v894_v5 = vpop.xlane.xlu1 %893  ;;  %950 = vadd.xlane.f32.xlu0 %v2053_v2 }
 0x347   : > { %1627 = vpow2.f32 %v930_v3  ;;  %v912_v6 = vsub.f32 %v851_v26, %v894_v5 }
 0x349   : > { %v2056_v7 = vpop.eup %1623  ;;  %v932_v8 = vmul.f32 1.442695, %v912_v6 }
 0x34a   : > { %v896_v9 = vpop.xlane.xlu0 %895  ;;  %952 = vadd.xlane.f32.xlu1 %v2056_v7 }
 0x34b   : > { %1629 = vpow2.f32 %v932_v8  ;;  %v913_v10 = vsub.f32 %v2029_v29, %v896_v9 }
 0x34d   : > { %v2060_v11 = vpop.eup %1625  ;;  %v934_v12 = vmul.f32 1.442695, %v913_v10 }
 0x34e   : > { %v898_v13 = vpop.xlane.xlu1 %897  ;;  %954 = vadd.xlane.f32.xlu0 %v2060_v11 }
 0x34f   : > { %1631 = vpow2.f32 %v934_v12  ;;  %v914_v4 = vsub.f32 %v2032_v32, %v898_v13 }
 0x351   : > { %v2064_v14 = vpop.eup %1627  ;;  %v936_v15 = vmul.f32 1.442695, %v914_v4 }
 0x352   : > { %v900_v16 = vpop.xlane.xlu0 %899  ;;  %956 = vadd.xlane.f32.xlu1 %v2064_v14 }
 0x353   : > { %1633 = vpow2.f32 %v936_v15  ;;  %v915_v17 = vsub.f32 %v2035_v35, %v900_v16 }
 0x355   : > { %v2068_v18 = vpop.eup %1629  ;;  %v938_v19 = vmul.f32 1.442695, %v915_v17 }
 0x356   : > { %v902_v20 = vpop.xlane.xlu1 %901  ;;  %958 = vadd.xlane.f32.xlu0 %v2068_v18 }
 0x357   : > { %1635 = vpow2.f32 %v938_v19  ;;  %v916_v21 = vsub.f32 %v2038_v38, %v902_v20 }
 0x359   : > { %v2072_v22 = vpop.eup %1631  ;;  %v940_v23 = vmul.f32 1.442695, %v916_v21 }
 0x35a   : > { %960 = vadd.xlane.f32.xlu1 %v2072_v22  ;;  %v904_v24 = vpop.xlane.xlu0 %903 }
 0x35b   : > { %1637 = vpow2.f32 %v940_v23  ;;  %v917_v25 = vsub.f32 %v2041_v41, %v904_v24 }
 0x35d   : > { %v2076_v26 = vpop.eup %1633  ;;  %v942_v27 = vmul.f32 1.442695, %v917_v25 }
 0x35e   : > { %962 = vadd.xlane.f32.xlu0 %v2076_v26 }
 0x35f   : > { %1639 = vpow2.f32 %v942_v27 }
 0x361   : > { %v2079_v28 = vpop.eup %1635 }
 0x362   : > { %964 = vadd.xlane.f32.xlu1 %v2079_v28 }
 0x365   : > { %v2082_v29 = vpop.eup %1637 }
 0x366   : > { %966 = vadd.xlane.f32.xlu0 %v2082_v29 }
 0x369   : > { %v2085_v30 = vpop.eup %1639 }
 0x36a   : > { %968 = vadd.xlane.f32.xlu1 %v2085_v30 }
 0x3c7   : > { %v945_v31 = vpop.xlane.xlu1 %944 }
 0x3c8   : > { %1641 = vrcp.f32 %v945_v31 }
 0x3cb   : > { %v947_v32 = vpop.xlane.xlu0 %946 }
 0x3cc   : > { %1643 = vrcp.f32 %v947_v32 }
 0x3cf   : > { %v949_v33 = vpop.xlane.xlu1 %948 }
 0x3d0   : > { %1645 = vrcp.f32 %v949_v33 }
 0x3d2   : > { %v1642_v34 = vpop.eup %1641 }
 0x3d3   : > { %v971_v35 = vmul.f32 %v1642_v34, %v2044_v54  ;;  %v951_v36 = vpop.xlane.xlu0 %950 }
 0x3d4   : > { %1647 = vrcp.f32 %v951_v36 }
 0x3d5   : > { %996 = vst [vmem:[%s2090_s20] sm:$0xff] %v971_v35 }
 0x3d6   : > { %v1644_v37 = vpop.eup %1643 }
 0x3d7   : > { %v973_v38 = vmul.f32 %v1644_v37, %v2047_v58  ;;  %v953_v39 = vpop.xlane.xlu1 %952 }
 0x3d8   : > { %1649 = vrcp.f32 %v953_v39 }
 0x3d9   : > { %997 = vst [vmem:[%s2090_s20 + $0x8] sm:$0xff] %v973_v38 }
 0x3da   : > { %v1646_v40 = vpop.eup %1645 }
 0x3db   : > { %v975_v41 = vmul.f32 %v1646_v40, %v2050_v62  ;;  %v955_v42 = vpop.xlane.xlu0 %954 }
 0x3dc   : > { %1651 = vrcp.f32 %v955_v42 }
 0x3dd   : > { %998 = vst [vmem:[%s2090_s20 + $0x10] sm:$0xff] %v975_v41 }
 0x3de   : > { %v1648_v43 = vpop.eup %1647 }
 0x3df   : > { %v977_v44 = vmul.f32 %v1648_v43, %v2053_v2  ;;  %v957_v45 = vpop.xlane.xlu1 %956 }
 0x3e0   : > { %1653 = vrcp.f32 %v957_v45 }
 0x3e1   : > { %999 = vst [vmem:[%s2090_s20 + $0x18] sm:$0xff] %v977_v44 }
 0x3e2   : > { %v1650_v46 = vpop.eup %1649 }
 0x3e3   : > { %v979_v47 = vmul.f32 %v1650_v46, %v2056_v7  ;;  %v959_v48 = vpop.xlane.xlu0 %958 }
 0x3e4   : > { %1655 = vrcp.f32 %v959_v48 }
 0x3e5   : > { %1000 = vst [vmem:[%s2090_s20 + $0x20] sm:$0xff] %v979_v47 }
 0x3e6   : > { %v1652_v49 = vpop.eup %1651 }
 0x3e7   : > { %v981_v50 = vmul.f32 %v1652_v49, %v2060_v11  ;;  %v961_v51 = vpop.xlane.xlu1 %960 }
 0x3e8   : > { %1657 = vrcp.f32 %v961_v51 }
 0x3e9   : > { %1001 = vst [vmem:[%s2090_s20 + $0x28] sm:$0xff] %v981_v50 }
 0x3ea   : > { %v1654_v52 = vpop.eup %1653 }
 0x3eb   : > { %v983_v53 = vmul.f32 %v1654_v52, %v2064_v14  ;;  %v963_v54 = vpop.xlane.xlu0 %962 }
 0x3ec   : > { %1659 = vrcp.f32 %v963_v54 }
 0x3ed   : > { %1002 = vst [vmem:[%s2090_s20 + $0x30] sm:$0xff] %v983_v53 }
 0x3ee   : > { %v1656_v55 = vpop.eup %1655 }
 0x3ef   : > { %v985_v56 = vmul.f32 %v1656_v55, %v2068_v18  ;;  %v965_v57 = vpop.xlane.xlu1 %964 }
 0x3f0   : > { %1661 = vrcp.f32 %v965_v57 }
 0x3f1   : > { %1003 = vst [vmem:[%s2090_s20 + $0x38] sm:$0xff] %v985_v56 }
 0x3f2   : > { %v1658_v58 = vpop.eup %1657 }
 0x3f3   : > { %v987_v59 = vmul.f32 %v1658_v58, %v2072_v22  ;;  %v967_v60 = vpop.xlane.xlu0 %966 }
 0x3f4   : > { %1663 = vrcp.f32 %v967_v60 }
 0x3f5   : > { %1004 = vst [vmem:[%s2090_s20 + $0x40] sm:$0xff] %v987_v59 }
 0x3f6   : > { %v1660_v61 = vpop.eup %1659 }
 0x3f7   : > { %v989_v62 = vmul.f32 %v1660_v61, %v2076_v26  ;;  %v969_v63 = vpop.xlane.xlu1 %968 }
 0x3f8   : > { %1665 = vrcp.f32 %v969_v63 }
 0x3f9   : > { %1005 = vst [vmem:[%s2090_s20 + $0x48] sm:$0xff] %v989_v62 }
 0x3fa   : > { %v1662_v0 = vpop.eup %1661 }
 0x3fb   : > { %v991_v1 = vmul.f32 %v1662_v0, %v2079_v28 }
 0x3fd   : > { %1006 = vst [vmem:[%s2090_s20 + $0x50] sm:$0xff] %v991_v1 }
 0x3fe   : > { %v1664_v2 = vpop.eup %1663 }
 0x3ff   : > { %v993_v3 = vmul.f32 %v1664_v2, %v2082_v29  ;;  %1015 = sbr.rel (!%p1828_p4) target bundleno = 1091 (0x443), region = 52 }
 0x401   : > { %1007 = vst [vmem:[%s2090_s20 + $0x58] sm:$0xff] %v993_v3 }
 0x402   : > { %v1666_v5 = vpop.eup %1665 }
 0x403   : > { %v995_v6 = vmul.f32 %v1666_v5, %v2085_v30 }
 0x405   : > { %1008 = vst [vmem:[%s2090_s20 + $0x60] sm:$0xff] %v995_v6 }
 0x406   : > { %s2222_s24 = smov (!%p1018_p8, %s1017_s24), 13 }
 0x407   : > { %s1322_s29 = sshll.u32 %s2222_s24, 7 }
 0x408   : > { %p1325_p9 = scmp.eq.s32.totalorder %s1322_s29, 0 }
 0x409   : > { %1667 = sdivrem.u32 (!%p1325_p9), %s2222_s24, 13 }
 0x40a   : > { %1026 = sbr.rel (%p1325_p9) target bundleno = 1091 (0x443), region = 56 }
 0x412   : > { %s2130_s9 = spop.drf %1667 }
 0x413   : > { %p1326_p10 = scmp.le.s32.totalorder %s2130_s9, 0 }
 0x414   : > { %s2215_s27 = smov (!%p1326_p10), %s2124_s26  ;;  %s2216_s14 = smov (!%p1326_p10), %s2090_s20 }
 0x415   : > { %1230 = sbr.rel (%p1326_p10) target bundleno = 1062 (0x426), region = 132  ;;  %s2139_s30 = smov (!%p1326_p10), 0  }
 0x416   : > { %s2141_s10 = smov (!%p1326_p10), 0  }
 0x41c LB: >> { %v1114_v7 = vld [vmem:[%s1733_s14] sm:$0xff]  ;;  %v1116_v8 = vld [vmem:[%s1733_s14 + $0x8] sm:$0xff]  ;;  %v1118_v9 = vld [vmem:[%s1733_s14 + $0x10] sm:$0xff]  ;;  %s1140_s11 = sadd.s32 1, %s1737_s30  ;;  %s1108_s10 = sadd.s32 1, %s1741_s10   ;;  %s1741_s10 = sphi %s2141_s10, %s1108_s10   ;;  %s1737_s30 = sphi %s2139_s30, %s2217_s30   ;;  %s1733_s14 = sphi %s2216_s14, %s1145_s14   ;;  %s1729_s27 = sphi %s2215_s27, %s1146_s27  }
 0x41d   : >> { %1115 = vst [vmem:[%s1729_s27] sm:$0xff] %v1114_v7  ;;  %1117 = vst [vmem:[%s1729_s27 + $0x8] sm:$0xff] %v1116_v8  ;;  %v1120_v10 = vld [vmem:[%s1733_s14 + $0x18] sm:$0xff]  ;;  %v1122_v11 = vld [vmem:[%s1733_s14 + $0x20] sm:$0xff]  ;;  %p1141_p11 = scmp.ge.s32.totalorder %s1140_s11, %s2130_s9  ;;  %p1107_p12 = scmp.ge.s32.totalorder %s1108_s10, %s2130_s9 }
 0x41e   : >> { %1119 = vst [vmem:[%s1729_s27 + $0x10] sm:$0xff] %v1118_v9  ;;  %v1124_v12 = vld [vmem:[%s1733_s14 + $0x28] sm:$0xff]  ;;  %1121 = vst [vmem:[%s1729_s27 + $0x18] sm:$0xff] %v1120_v10  ;;  %v1126_v13 = vld [vmem:[%s1733_s14 + $0x30] sm:$0xff] }
 0x41f   : >> { %1123 = vst [vmem:[%s1729_s27 + $0x20] sm:$0xff] %v1122_v11  ;;  %1125 = vst [vmem:[%s1729_s27 + $0x28] sm:$0xff] %v1124_v12  ;;  %v1128_v4 = vld [vmem:[%s1733_s14 + $0x38] sm:$0xff]  ;;  %v1130_v14 = vld [vmem:[%s1733_s14 + $0x40] sm:$0xff]  ;;  %s2224_s11 = smov (%p1141_p11, %s1140_s11), 0  ;;  %1110 = sbr.rel (!%p1107_p12) target bundleno = 1052 (0x41c), region = 138 }
 0x420   : >> { %1127 = vst [vmem:[%s1729_s27 + $0x30] sm:$0xff] %v1126_v13  ;;  %1129 = vst [vmem:[%s1729_s27 + $0x38] sm:$0xff] %v1128_v4  ;;  %v1132_v15 = vld [vmem:[%s1733_s14 + $0x48] sm:$0xff]  ;;  %v1134_v16 = vld [vmem:[%s1733_s14 + $0x50] sm:$0xff]  ;;  %s1143_s12 = smul.u32 104, %s2224_s11  ;;  %s2217_s30 = smov %s2224_s11 }
 0x421   : >> { %1131 = vst [vmem:[%s1729_s27 + $0x40] sm:$0xff] %v1130_v14  ;;  %v1136_v17 = vld [vmem:[%s1733_s14 + $0x58] sm:$0xff]  ;;  %1133 = vst [vmem:[%s1729_s27 + $0x48] sm:$0xff] %v1132_v15  ;;  %v1138_v18 = vld [vmem:[%s1733_s14 + $0x60] sm:$0xff] }
 0x422   : >> { %1135 = vst [vmem:[%s1729_s27 + $0x50] sm:$0xff] %v1134_v16  ;;  %1137 = vst [vmem:[%s1729_s27 + $0x58] sm:$0xff] %v1136_v17  ;;  %s1145_s14 = scalar_lea.vmem %s2090_s20, %s1143_s12 [#allocation2]  }
 0x423   : >> { %1139 = vst [vmem:[%s1729_s27 + $0x60] sm:$0xff] %v1138_v18  ;;  %s1146_s27 = scalar_lea.vmem %s2124_s26, %s1143_s12  }
 0x426 PF: > { %1669 = sdivrem.u32 %s2222_s24, 13 }
 0x427   : > { %s1327_s13 = smul.u32 104, %s2130_s9 }
 0x429   : > { %s1151_s15 = scalar_lea.vmem %s2090_s20, %s1327_s13 [#allocation2]   ;;  %s1153_s16 = scalar_lea.vmem %s2124_s26, %s1327_s13  }
 0x42f   : > { %s1670_s17 = spop.drf %1669 }
 0x430   : > { %p1329_p13 = scmp.le.s32.totalorder %s1670_s17, 0 }
 0x431   : > { %s1743_s18 = smov (!%p1329_p13), %s1153_s16   ;;  %s1747_s19 = smov (!%p1329_p13), %s1151_s15  }
 0x432   : > { %1244 = sbr.rel (%p1329_p13) target bundleno = 1091 (0x443), region = 143  ;;  %s1751_s21 = smov (!%p1329_p13), 0  }
 0x433   : > { %s1755_s22 = smov (!%p1329_p13), 0  }
 0x439 LB: >> { %v1163_v19 = vld [vmem:[%s1749_s19] sm:$0xff]  ;;  %s1165_s23 = sadd.s32 1, %s1753_s21  ;;  %s1157_s22 = sadd.s32 1, %s1757_s22   ;;  %s1757_s22 = sphi %s1755_s22, %s1157_s22   ;;  %s1753_s21 = sphi %s1751_s21, %s1752_s21   ;;  %s1749_s19 = sphi %s1747_s19, %s1170_s19   ;;  %s1745_s18 = sphi %s1743_s18, %s1171_s18  }
 0x43a   : >> { %1164 = vst [vmem:[%s1745_s18] sm:$0xff] %v1163_v19  ;;  %p1166_p0 = scmp.ge.s32.totalorder %s1165_s23, %s1670_s17  ;;  %p1156_p1 = scmp.ge.s32.totalorder %s1157_s22, %s1670_s17 }
 0x43c   : >> { %s2226_s23 = smov (%p1166_p0, %s1165_s23), 0  ;;  %1159 = sbr.rel (!%p1156_p1) target bundleno = 1081 (0x439), region = 149 }
 0x43d   : >> { %s1330_s20 = sshll.u32 %s2226_s23, 3  ;;  %s1752_s21 = smov %s2226_s23  }
 0x43e   : >> { %s1170_s19 = scalar_lea.vmem %s1151_s15, %s1330_s20 [#allocation2]   ;;  %s1171_s18 = scalar_lea.vmem %s1153_s16, %s1330_s20  }
 0x443 PF: > { %p14_p2 = scmp.ge.s32.totalorder %s1818_s28, 4   ;;  %s2218_s24 = smov %s1721_s25 }
 0x444   : > { %s2219_s25 = smov %s1826_s8  ;;  %s2220_s26 = smov %s1818_s28 }
 0x445   :  { %16 = sbr.rel (!%p14_p2) target bundleno = 2 (0x2), region = 160 }

</bundles_post_ra>
